<compile_context>
chip_gen: v6e
topology: v6e:2x2x1
jax: 0.10.0
libtpu: 0.0.40
codegen_flags: <defaults>
</compile_context>

<pallas_src>
import functools

import jax
import jax.numpy as jnp
from jax.experimental import pallas as pl
from jax.experimental.pallas import tpu as pltpu

NEG_SLOPE = 0.01   # F.leaky_relu default
BN_EPS = 1e-5      # nn.BatchNorm1d default


def _round_up(x, m):
    return (x + m - 1) // m * m


def _choose_tb(B, Np, Dip, Dop, k, itemsize, budget_bytes=24 << 20, cap=8):
    """Batch elements per grid step so double-buffered blocks of BOTH kernels
    fit in ~24 MiB (under the 32 MiB scoped-VMEM default; conservative for
    v7x's 64 MiB physical VMEM)."""
    per_b = 2 * itemsize * Np * (Np + Dip + Dop) + 2 * 4 * Np * Dop
    fixed = 2 * itemsize * k * Dip * Dop + 4 * 4 * Dop
    avail = max(budget_bytes - fixed, per_b)
    return int(max(1, min(B, cap, avail // per_b)))


def gcn_kernel(a_ref, x_ref, wt_ref, y_ref, psum_ref, psq_ref, *, k, tb):
    """Per grid step: TB batch elements of y = sum_kk (A^(kk+1) X) W_kk^T via
    iterative propagation (ax <- A @ ax), plus per-step partial BN stats."""
    wt = wt_ref[...]                                   # (k, Dip, Dop)
    dop = psum_ref.shape[-1]
    s = jnp.zeros((1, dop), jnp.float32)
    sq = jnp.zeros((1, dop), jnp.float32)
    for b in range(tb):                                # tb small & static -> unrolled
        a = a_ref[b]                                   # (Np, Np), matmul dtype
        ax = jnp.dot(a, x_ref[b], preferred_element_type=jnp.float32)
        acc = jnp.dot(ax.astype(wt.dtype), wt[0],
                      preferred_element_type=jnp.float32)
        for kk in range(1, k):
            ax = jnp.dot(a, ax.astype(a.dtype),
                         preferred_element_type=jnp.float32)
            acc = acc + jnp.dot(ax.astype(wt.dtype), wt[kk],
                                preferred_element_type=jnp.float32)
        y_ref[b] = acc.astype(y_ref.dtype)             # one bulk lane-dense store
        s = s + jnp.sum(acc, axis=0, keepdims=True)
        sq = sq + jnp.sum(acc * acc, axis=0, keepdims=True)
    psum_ref[0] = s                                    # per-step partials -> no serial dep
    psq_ref[0] = sq


def bn_lrelu_kernel(y_ref, scale_ref, shift_ref, o_ref):
    z = y_ref[...].astype(jnp.float32) * scale_ref[0] + shift_ref[0]
    o_ref[...] = jnp.where(z >= 0, z, NEG_SLOPE * z)


def mpnn_mk_v2_forward(X, A, W, bias, gamma, beta, k, *,
                       matmul_dtype=jnp.bfloat16):
    """X: (B,N,Din), A: (B,N,N), W: (k,Dout,Din), bias: (k,Dout)."""
    B, N, Din = X.shape
    Dout = W.shape[1]
    del bias  # per-channel constant: cancelled exactly by training-mode BN

    Np = _round_up(N, 8)        # sublane alignment
    Dip = _round_up(Din, 128)   # lane-dense X / matmul contraction dim
    Dop = _round_up(Dout, 128)  # lane-dense outputs -> unmasked stores

    itemsize = jnp.dtype(matmul_dtype).itemsize
    tb = _choose_tb(B, Np, Dip, Dop, k, itemsize)
    nb = pl.cdiv(B, tb)
    Bp = nb * tb

    # Zero-pad (exact: padded rows/cols/batches contribute nothing).
    A_p = jnp.pad(A, ((0, Bp - B), (0, Np - N), (0, Np - N))).astype(matmul_dtype)
    X_p = jnp.pad(X, ((0, Bp - B), (0, Np - N), (0, Dip - Din))).astype(matmul_dtype)
    WT_p = jnp.pad(jnp.transpose(W, (0, 2, 1)),
                   ((0, 0), (0, Dip - Din), (0, Dop - Dout))).astype(matmul_dtype)

    y, ps, pss = pl.pallas_call(
        functools.partial(gcn_kernel, k=k, tb=tb),
        out_shape=(
            jax.ShapeDtypeStruct((Bp, Np, Dop), matmul_dtype),
            jax.ShapeDtypeStruct((nb, 1, Dop), jnp.float32),
            jax.ShapeDtypeStruct((nb, 1, Dop), jnp.float32),
        ),
        grid_spec=pltpu.PrefetchScalarGridSpec(
            num_scalar_prefetch=0,
            grid=(nb,),
            in_specs=[
                pl.BlockSpec((tb, Np, Np), lambda b: (b, 0, 0)),
                pl.BlockSpec((tb, Np, Dip), lambda b: (b, 0, 0)),
                pl.BlockSpec((k, Dip, Dop), lambda b: (0, 0, 0)),
            ],
            out_specs=[
                pl.BlockSpec((tb, Np, Dop), lambda b: (b, 0, 0)),
                pl.BlockSpec((1, 1, Dop), lambda b: (b, 0, 0)),
                pl.BlockSpec((1, 1, Dop), lambda b: (b, 0, 0)),
            ],
        ),
        compiler_params=pltpu.CompilerParams(
            dimension_semantics=("parallel",)),   # batch axis can shard across TCs (v7x)
    )(A_p, X_p, WT_p)

    # Finalize batch-norm statistics (tiny per-channel XLA glue).
    cnt = jnp.float32(B * N)                      # real (unpadded) count
    mean = jnp.sum(ps, axis=0) / cnt              # (1, Dop)
    var = jnp.sum(pss, axis=0) / cnt - mean * mean
    # Note: single-pass E[x^2]-mean^2; clamp guards tiny negative values from
    # cancellation (a two-pass/Welford variant would be safer for large means).
    var = jnp.maximum(var, 0.0)
    gamma_p = jnp.pad(gamma, (0, Dop - Dout))[None, :].astype(jnp.float32)
    beta_p = jnp.pad(beta, (0, Dop - Dout))[None, :].astype(jnp.float32)
    scale = gamma_p / jnp.sqrt(var + BN_EPS)
    shift = beta_p - mean * scale

    out_p = pl.pallas_call(
        bn_lrelu_kernel,
        out_shape=jax.ShapeDtypeStruct((Bp, Np, Dop), jnp.float32),
        grid_spec=pltpu.PrefetchScalarGridSpec(
            num_scalar_prefetch=0,
            grid=(nb,),
            in_specs=[
                pl.BlockSpec((tb, Np, Dop), lambda b: (b, 0, 0)),
                pl.BlockSpec((1, Dop), lambda b: (0, 0)),
                pl.BlockSpec((1, Dop), lambda b: (0, 0)),
            ],
            out_specs=pl.BlockSpec((tb, Np, Dop), lambda b: (b, 0, 0)),
        ),
        compiler_params=pltpu.CompilerParams(
            dimension_semantics=("parallel",)),
    )(y, scale, shift)

    return out_p[:B, :N, :Dout]


def reference_forward(X, A, W, bias, gamma, beta, k):
    """Pure-JAX f32 mirror of the PyTorch module (training-mode BN, with bias)."""
    out = None
    A_ = A
    for kk in range(k):
        if kk > 0:
            A_ = jnp.einsum('bij,bjk->bik', A_, A, precision='highest')
        ax = jnp.einsum('bij,bjd->bid', A_, X, precision='highest')
        o = jnp.einsum('bnd,od->bno', ax, W[kk], precision='highest') + bias[kk]
        out = o if out is None else out + o
    mean = jnp.mean(out, axis=(0, 1))
    var = jnp.mean((out - mean) ** 2, axis=(0, 1))
    z = (out - mean) / jnp.sqrt(var + BN_EPS) * gamma + beta
    return jnp.where(z >= 0, z, NEG_SLOPE * z)


if __name__ == "__main__":
    # Small, deterministic problem: B=2 graphs, N=16 nodes, Din=8 -> Dout=16, k=3 hops.
    B, N, Din, Dout, K = 2, 16, 8, 16, 3

    key = jax.random.PRNGKey(0)
    kx, ka, kw, kb = jax.random.split(key, 4)

    X = jax.random.normal(kx, (B, N, Din), dtype=jnp.float32)
    # Row-normalized-ish adjacency keeps A^k X well conditioned.
    A = jax.random.uniform(ka, (B, N, N), dtype=jnp.float32) / N

    bound = 1.0 / (Din ** 0.5)
    W = jax.random.uniform(kw, (K, Dout, Din), jnp.float32,
                           minval=-bound, maxval=bound)
    bias = jax.random.uniform(kb, (K, Dout), jnp.float32,
                              minval=-bound, maxval=bound)
    gamma = jnp.ones((Dout,), jnp.float32)
    beta = jnp.zeros((Dout,), jnp.float32)

    ref = reference_forward(X, A, W, bias, gamma, beta, K)

    out_bf = jax.block_until_ready(
        mpnn_mk_v2_forward(X, A, W, bias, gamma, beta, K))      # bf16 MXU operands
    out_f32 = jax.block_until_ready(
        mpnn_mk_v2_forward(X, A, W, bias, gamma, beta, K,
                           matmul_dtype=jnp.float32))           # full f32 path

    assert out_bf.shape == (B, N, Dout) and out_f32.shape == (B, N, Dout)
    err_f32 = float(jnp.max(jnp.abs(out_f32 - ref)))
    err_bf = float(jnp.max(jnp.abs(out_bf - ref)))
    assert bool(jnp.allclose(out_f32, ref, rtol=1e-2, atol=1e-2)), \
        f"f32 path mismatch vs reference (max abs err {err_f32})"
    assert bool(jnp.allclose(out_bf, ref, rtol=3e-2, atol=3e-2)), \
        f"bf16 path mismatch vs reference (max abs err {err_bf})"

    print("KERNEL_OK")
</pallas_src>

<mosaic_0001>
module attributes {stable_mosaic.version = 11 : i64} {
  func.func @gcn_kernel(%arg0: i32, %arg1: memref<2x16x16xbf16, #tpu.memory_space<vmem>>, %arg2: memref<2x16x128xbf16, #tpu.memory_space<vmem>>, %arg3: memref<3x128x128xbf16, #tpu.memory_space<vmem>>, %arg4: memref<2x16x128xbf16, #tpu.memory_space<vmem>>, %arg5: memref<1x1x128xf32, #tpu.memory_space<vmem>>, %arg6: memref<1x1x128xf32, #tpu.memory_space<vmem>>) attributes {dimension_semantics = [#tpu.dimension_semantics<parallel>], iteration_bounds = array<i64: 1>, scalar_prefetch = 0 : i64, scratch_operands = 0 : i64, tpu.core_type = #tpu.core_type<tc>, window_params = [{transform_indices = @transform_0, window_bounds = array<i64: 2, 16, 16>}, {transform_indices = @transform_1, window_bounds = array<i64: 2, 16, 128>}, {pipeline_mode = #tpu.pipeline_mode<synchronous>, transform_indices = @transform_2, window_bounds = array<i64: 3, 128, 128>}, {transform_indices = @transform_3, window_bounds = array<i64: 2, 16, 128>}, {transform_indices = @transform_4, window_bounds = array<i64: 1, 1, 128>}, {transform_indices = @transform_5, window_bounds = array<i64: 1, 1, 128>}]} {
    %c0 = arith.constant 0 : index
    %c0_0 = arith.constant 0 : index
    %c0_1 = arith.constant 0 : index
    %0 = vector.load %arg3[%c0, %c0_0, %c0_1] : memref<3x128x128xbf16, #tpu.memory_space<vmem>>, vector<3x128x128xbf16>
    %cst = arith.constant 0.000000e+00 : f32
    %1 = vector.broadcast %cst : f32 to vector<1x128xf32>
    %cst_2 = arith.constant 0.000000e+00 : f32
    %2 = vector.broadcast %cst_2 : f32 to vector<1x128xf32>
    %c0_3 = arith.constant 0 : index
    %c0_4 = arith.constant 0 : index
    %c0_5 = arith.constant 0 : index
    %3 = vector.load %arg1[%c0_3, %c0_4, %c0_5] : memref<2x16x16xbf16, #tpu.memory_space<vmem>>, vector<1x16x16xbf16>
    %4 = vector.shape_cast %3 : vector<1x16x16xbf16> to vector<16x16xbf16>
    %c0_6 = arith.constant 0 : index
    %c0_7 = arith.constant 0 : index
    %c0_8 = arith.constant 0 : index
    %5 = vector.load %arg2[%c0_6, %c0_7, %c0_8] : memref<2x16x128xbf16, #tpu.memory_space<vmem>>, vector<1x16x128xbf16>
    %6 = vector.shape_cast %5 : vector<1x16x128xbf16> to vector<16x128xbf16>
    %cst_9 = arith.constant dense<0.000000e+00> : vector<16x128xf32>
    %7 = tpu.matmul %4, %6, %cst_9 {dimension_numbers = #tpu.dot_dimension_numbers<[1], [0], [0], [1], [0, 0, 1, 1], [], []>} : vector<16x16xbf16>, vector<16x128xbf16>, vector<16x128xf32> -> vector<16x128xf32>
    %8 = arith.truncf %7 : vector<16x128xf32> to vector<16x128xbf16>
    %9 = vector.extract_strided_slice %0 {offsets = [0, 0, 0], sizes = [1, 128, 128], strides = [1, 1, 1]} : vector<3x128x128xbf16> to vector<1x128x128xbf16>
    %10 = vector.shape_cast %9 : vector<1x128x128xbf16> to vector<128x128xbf16>
    %cst_10 = arith.constant dense<0.000000e+00> : vector<16x128xf32>
    %11 = tpu.matmul %8, %10, %cst_10 {dimension_numbers = #tpu.dot_dimension_numbers<[1], [0], [0], [1], [0, 0, 1, 1], [], []>} : vector<16x128xbf16>, vector<128x128xbf16>, vector<16x128xf32> -> vector<16x128xf32>
    %12 = arith.truncf %7 : vector<16x128xf32> to vector<16x128xbf16>
    %cst_11 = arith.constant dense<0.000000e+00> : vector<16x128xf32>
    %13 = tpu.matmul %4, %12, %cst_11 {dimension_numbers = #tpu.dot_dimension_numbers<[1], [0], [0], [1], [0, 0, 1, 1], [], []>} : vector<16x16xbf16>, vector<16x128xbf16>, vector<16x128xf32> -> vector<16x128xf32>
    %14 = arith.truncf %13 : vector<16x128xf32> to vector<16x128xbf16>
    %15 = vector.extract_strided_slice %0 {offsets = [1, 0, 0], sizes = [1, 128, 128], strides = [1, 1, 1]} : vector<3x128x128xbf16> to vector<1x128x128xbf16>
    %16 = vector.shape_cast %15 : vector<1x128x128xbf16> to vector<128x128xbf16>
    %cst_12 = arith.constant dense<0.000000e+00> : vector<16x128xf32>
    %17 = tpu.matmul %14, %16, %cst_12 {dimension_numbers = #tpu.dot_dimension_numbers<[1], [0], [0], [1], [0, 0, 1, 1], [], []>} : vector<16x128xbf16>, vector<128x128xbf16>, vector<16x128xf32> -> vector<16x128xf32>
    %18 = arith.addf %11, %17 : vector<16x128xf32>
    %19 = arith.truncf %13 : vector<16x128xf32> to vector<16x128xbf16>
    %cst_13 = arith.constant dense<0.000000e+00> : vector<16x128xf32>
    %20 = tpu.matmul %4, %19, %cst_13 {dimension_numbers = #tpu.dot_dimension_numbers<[1], [0], [0], [1], [0, 0, 1, 1], [], []>} : vector<16x16xbf16>, vector<16x128xbf16>, vector<16x128xf32> -> vector<16x128xf32>
    %21 = arith.truncf %20 : vector<16x128xf32> to vector<16x128xbf16>
    %22 = vector.extract_strided_slice %0 {offsets = [2, 0, 0], sizes = [1, 128, 128], strides = [1, 1, 1]} : vector<3x128x128xbf16> to vector<1x128x128xbf16>
    %23 = vector.shape_cast %22 : vector<1x128x128xbf16> to vector<128x128xbf16>
    %cst_14 = arith.constant dense<0.000000e+00> : vector<16x128xf32>
    %24 = tpu.matmul %21, %23, %cst_14 {dimension_numbers = #tpu.dot_dimension_numbers<[1], [0], [0], [1], [0, 0, 1, 1], [], []>} : vector<16x128xbf16>, vector<128x128xbf16>, vector<16x128xf32> -> vector<16x128xf32>
    %25 = arith.addf %18, %24 : vector<16x128xf32>
    %26 = arith.truncf %25 : vector<16x128xf32> to vector<16x128xbf16>
    %c0_15 = arith.constant 0 : index
    %c0_16 = arith.constant 0 : index
    %c0_17 = arith.constant 0 : index
    %27 = vector.load %arg4[%c0_15, %c0_16, %c0_17] : memref<2x16x128xbf16, #tpu.memory_space<vmem>>, vector<1x16x128xbf16>
    %28 = vector.shape_cast %27 : vector<1x16x128xbf16> to vector<16x128xbf16>
    %29 = vector.shape_cast %26 : vector<16x128xbf16> to vector<1x16x128xbf16>
    tpu.vector_store %arg4[%c0_15, %c0_16, %c0_17], %29 {strides = array<i32>} : memref<2x16x128xbf16, #tpu.memory_space<vmem>>, vector<1x16x128xbf16>,
    %cst_18 = arith.constant dense<0.000000e+00> : vector<128xf32>
    %30 = vector.multi_reduction <add>, %25, %cst_18 [0] : vector<16x128xf32> to vector<128xf32>
    %31 = vector.shape_cast %30 : vector<128xf32> to vector<1x128xf32>
    %32 = arith.addf %1, %31 : vector<1x128xf32>
    %33 = arith.mulf %25, %25 : vector<16x128xf32>
    %cst_19 = arith.constant dense<0.000000e+00> : vector<128xf32>
    %34 = vector.multi_reduction <add>, %33, %cst_19 [0] : vector<16x128xf32> to vector<128xf32>
    %35 = vector.shape_cast %34 : vector<128xf32> to vector<1x128xf32>
    %36 = arith.addf %2, %35 : vector<1x128xf32>
    %c1 = arith.constant 1 : index
    %c0_20 = arith.constant 0 : index
    %c0_21 = arith.constant 0 : index
    %37 = vector.load %arg1[%c1, %c0_20, %c0_21] : memref<2x16x16xbf16, #tpu.memory_space<vmem>>, vector<1x16x16xbf16>
    %38 = vector.shape_cast %37 : vector<1x16x16xbf16> to vector<16x16xbf16>
    %c1_22 = arith.constant 1 : index
    %c0_23 = arith.constant 0 : index
    %c0_24 = arith.constant 0 : index
    %39 = vector.load %arg2[%c1_22, %c0_23, %c0_24] : memref<2x16x128xbf16, #tpu.memory_space<vmem>>, vector<1x16x128xbf16>
    %40 = vector.shape_cast %39 : vector<1x16x128xbf16> to vector<16x128xbf16>
    %cst_25 = arith.constant dense<0.000000e+00> : vector<16x128xf32>
    %41 = tpu.matmul %38, %40, %cst_25 {dimension_numbers = #tpu.dot_dimension_numbers<[1], [0], [0], [1], [0, 0, 1, 1], [], []>} : vector<16x16xbf16>, vector<16x128xbf16>, vector<16x128xf32> -> vector<16x128xf32>
    %42 = arith.truncf %41 : vector<16x128xf32> to vector<16x128xbf16>
    %43 = vector.extract_strided_slice %0 {offsets = [0, 0, 0], sizes = [1, 128, 128], strides = [1, 1, 1]} : vector<3x128x128xbf16> to vector<1x128x128xbf16>
    %44 = vector.shape_cast %43 : vector<1x128x128xbf16> to vector<128x128xbf16>
    %cst_26 = arith.constant dense<0.000000e+00> : vector<16x128xf32>
    %45 = tpu.matmul %42, %44, %cst_26 {dimension_numbers = #tpu.dot_dimension_numbers<[1], [0], [0], [1], [0, 0, 1, 1], [], []>} : vector<16x128xbf16>, vector<128x128xbf16>, vector<16x128xf32> -> vector<16x128xf32>
    %46 = arith.truncf %41 : vector<16x128xf32> to vector<16x128xbf16>
    %cst_27 = arith.constant dense<0.000000e+00> : vector<16x128xf32>
    %47 = tpu.matmul %38, %46, %cst_27 {dimension_numbers = #tpu.dot_dimension_numbers<[1], [0], [0], [1], [0, 0, 1, 1], [], []>} : vector<16x16xbf16>, vector<16x128xbf16>, vector<16x128xf32> -> vector<16x128xf32>
    %48 = arith.truncf %47 : vector<16x128xf32> to vector<16x128xbf16>
    %49 = vector.extract_strided_slice %0 {offsets = [1, 0, 0], sizes = [1, 128, 128], strides = [1, 1, 1]} : vector<3x128x128xbf16> to vector<1x128x128xbf16>
    %50 = vector.shape_cast %49 : vector<1x128x128xbf16> to vector<128x128xbf16>
    %cst_28 = arith.constant dense<0.000000e+00> : vector<16x128xf32>
    %51 = tpu.matmul %48, %50, %cst_28 {dimension_numbers = #tpu.dot_dimension_numbers<[1], [0], [0], [1], [0, 0, 1, 1], [], []>} : vector<16x128xbf16>, vector<128x128xbf16>, vector<16x128xf32> -> vector<16x128xf32>
    %52 = arith.addf %45, %51 : vector<16x128xf32>
    %53 = arith.truncf %47 : vector<16x128xf32> to vector<16x128xbf16>
    %cst_29 = arith.constant dense<0.000000e+00> : vector<16x128xf32>
    %54 = tpu.matmul %38, %53, %cst_29 {dimension_numbers = #tpu.dot_dimension_numbers<[1], [0], [0], [1], [0, 0, 1, 1], [], []>} : vector<16x16xbf16>, vector<16x128xbf16>, vector<16x128xf32> -> vector<16x128xf32>
    %55 = arith.truncf %54 : vector<16x128xf32> to vector<16x128xbf16>
    %56 = vector.extract_strided_slice %0 {offsets = [2, 0, 0], sizes = [1, 128, 128], strides = [1, 1, 1]} : vector<3x128x128xbf16> to vector<1x128x128xbf16>
    %57 = vector.shape_cast %56 : vector<1x128x128xbf16> to vector<128x128xbf16>
    %cst_30 = arith.constant dense<0.000000e+00> : vector<16x128xf32>
    %58 = tpu.matmul %55, %57, %cst_30 {dimension_numbers = #tpu.dot_dimension_numbers<[1], [0], [0], [1], [0, 0, 1, 1], [], []>} : vector<16x128xbf16>, vector<128x128xbf16>, vector<16x128xf32> -> vector<16x128xf32>
    %59 = arith.addf %52, %58 : vector<16x128xf32>
    %60 = arith.truncf %59 : vector<16x128xf32> to vector<16x128xbf16>
    %c1_31 = arith.constant 1 : index
    %c0_32 = arith.constant 0 : index
    %c0_33 = arith.constant 0 : index
    %61 = vector.load %arg4[%c1_31, %c0_32, %c0_33] : memref<2x16x128xbf16, #tpu.memory_space<vmem>>, vector<1x16x128xbf16>
    %62 = vector.shape_cast %61 : vector<1x16x128xbf16> to vector<16x128xbf16>
    %63 = vector.shape_cast %60 : vector<16x128xbf16> to vector<1x16x128xbf16>
    tpu.vector_store %arg4[%c1_31, %c0_32, %c0_33], %63 {strides = array<i32>} : memref<2x16x128xbf16, #tpu.memory_space<vmem>>, vector<1x16x128xbf16>,
    %cst_34 = arith.constant dense<0.000000e+00> : vector<128xf32>
    %64 = vector.multi_reduction <add>, %59, %cst_34 [0] : vector<16x128xf32> to vector<128xf32>
    %65 = vector.shape_cast %64 : vector<128xf32> to vector<1x128xf32>
    %66 = arith.addf %32, %65 : vector<1x128xf32>
    %67 = arith.mulf %59, %59 : vector<16x128xf32>
    %cst_35 = arith.constant dense<0.000000e+00> : vector<128xf32>
    %68 = vector.multi_reduction <add>, %67, %cst_35 [0] : vector<16x128xf32> to vector<128xf32>
    %69 = vector.shape_cast %68 : vector<128xf32> to vector<1x128xf32>
    %70 = arith.addf %36, %69 : vector<1x128xf32>
    %c0_36 = arith.constant 0 : index
    %c0_37 = arith.constant 0 : index
    %c0_38 = arith.constant 0 : index
    %71 = vector.load %arg5[%c0_36, %c0_37, %c0_38] : memref<1x1x128xf32, #tpu.memory_space<vmem>>, vector<1x1x128xf32>
    %72 = vector.shape_cast %71 : vector<1x1x128xf32> to vector<1x128xf32>
    %73 = vector.shape_cast %66 : vector<1x128xf32> to vector<1x1x128xf32>
    tpu.vector_store %arg5[%c0_36, %c0_37, %c0_38], %73 {strides = array<i32>} : memref<1x1x128xf32, #tpu.memory_space<vmem>>, vector<1x1x128xf32>,
    %c0_39 = arith.constant 0 : index
    %c0_40 = arith.constant 0 : index
    %c0_41 = arith.constant 0 : index
    %74 = vector.load %arg6[%c0_39, %c0_40, %c0_41] : memref<1x1x128xf32, #tpu.memory_space<vmem>>, vector<1x1x128xf32>
    %75 = vector.shape_cast %74 : vector<1x1x128xf32> to vector<1x128xf32>
    %76 = vector.shape_cast %70 : vector<1x128xf32> to vector<1x1x128xf32>
    tpu.vector_store %arg6[%c0_39, %c0_40, %c0_41], %76 {strides = array<i32>} : memref<1x1x128xf32, #tpu.memory_space<vmem>>, vector<1x1x128xf32>,
    return
  }
  func.func @transform_0(%arg0: i32) -> (i32, i32, i32) {
    %c0_i32 = arith.constant 0 : i32
    %c0_i32_0 = arith.constant 0 : i32
    %c0_i32_1 = arith.constant 0 : i32
    return %arg0, %c0_i32, %c0_i32_0 : i32, i32, i32
  }
  func.func @transform_1(%arg0: i32) -> (i32, i32, i32) {
    %c0_i32 = arith.constant 0 : i32
    %c0_i32_0 = arith.constant 0 : i32
    %c0_i32_1 = arith.constant 0 : i32
    return %arg0, %c0_i32, %c0_i32_0 : i32, i32, i32
  }
  func.func @transform_2(%arg0: i32) -> (i32, i32, i32) {
    %c0_i32 = arith.constant 0 : i32
    %c0_i32_0 = arith.constant 0 : i32
    %c0_i32_1 = arith.constant 0 : i32
    %c0_i32_2 = arith.constant 0 : i32
    return %c0_i32, %c0_i32_0, %c0_i32_1 : i32, i32, i32
  }
  func.func @transform_3(%arg0: i32) -> (i32, i32, i32) {
    %c0_i32 = arith.constant 0 : i32
    %c0_i32_0 = arith.constant 0 : i32
    %c0_i32_1 = arith.constant 0 : i32
    return %arg0, %c0_i32, %c0_i32_0 : i32, i32, i32
  }
  func.func @transform_4(%arg0: i32) -> (i32, i32, i32) {
    %c0_i32 = arith.constant 0 : i32
    %c0_i32_0 = arith.constant 0 : i32
    %c0_i32_1 = arith.constant 0 : i32
    return %arg0, %c0_i32, %c0_i32_0 : i32, i32, i32
  }
  func.func @transform_5(%arg0: i32) -> (i32, i32, i32) {
    %c0_i32 = arith.constant 0 : i32
    %c0_i32_0 = arith.constant 0 : i32
    %c0_i32_1 = arith.constant 0 : i32
    return %arg0, %c0_i32, %c0_i32_0 : i32, i32, i32
  }
}

</mosaic_0001>

<bundles_post_ra>
// kernel: tpu_custom_call.1
= control target key start
LH: loop header
LB: loop body
LE: loop exit
PB: predicated region body
PF: predicated region fallthrough
CT: control target
= control target key end

     0   :  { %11 = vsyncpa [#allocation3], 0  ;;  %s1606_s0 = inlined_call_operand.hbm [shape: bf16[2,16,16], index: 0, kind: input, shape index: {}]   ;;  %s1607_s1 = inlined_call_operand.hbm [shape: bf16[2,16,128], index: 1, kind: input, shape index: {}]   ;;  %s1608_s2 = inlined_call_operand.hbm [shape: bf16[3,128,128], index: 2, kind: input, shape index: {}]   ;;  %s1609_s3 = inlined_call_operand.hbm [shape: bf16[2,16,128], index: 3, kind: output, shape index: {0}]   ;;  %s1610_s4 = inlined_call_operand.hbm [shape: f32[1,1,128], index: 4, kind: output, shape index: {1}]   ;;  %s1611_s5 = inlined_call_operand.hbm [shape: f32[1,1,128], index: 5, kind: output, shape index: {2}]  }
   0x1   :  { %12 = vsyncpa [#allocation6], 0 }
   0x2   :  { %13 = vsyncpa [#allocation4], 0 }
   0x3   :  { %14 = vsyncpa [#allocation10], 0  ;;  %s1338_s18 = smov [#allocation5]   ;;  %s1339_s20 = smov [#allocation2]  }
   0x4   :  { %s32_s19 = sshll.u32 %s1338_s18, 4  ;;  %s20_s21 = sshll.u32 %s1339_s20, 4  ;;  %s33_s19 = int_to_ptr.vmem [resolvable:$true] %s32_s19  ;;  %s21_s21 = int_to_ptr.vmem [resolvable:$true] %s20_s21 }
   0x5   :  { %s1218_s22 = scalar_lea.vmem %s33_s19, 256  ;;  %p1223_p1 = scmp.lt.s32.totalorder %s33_s19, %s33_s19 }
   0x6   :  { %p1219_p0 = scmp.ne.s32.totalorder %s33_s19, %s1218_s22  ;;  %p1224_p2 = scmp.lt.s32.totalorder %s1218_s22, %s1218_s22 }
   0x8   :  { %p1225_p3 = por %p1224_p2, %p1223_p1 }
   0xa   :  { %p1226_p4 = pnand %p1225_p3, %p1219_p0 }
   0xc   :  { %1229 = shalt.err (!%p1226_p4)
}
   0xd   :  { %s1340_s23 = smov 64   ;;  %s1341_s24 = smov 4  }
   0xe   :  { %38 = dma.hbm_to_vmem [thread:$0]  %s1607_s1, 256, %s33_s19, [#allocation6], %s1340_s23, %s1340_s23, %s1341_s24  }
   0xf   :  { %s1238_s27 = scalar_lea.vmem %s21_s21, 256  ;;  %p1243_p6 = scmp.lt.s32.totalorder %s21_s21, %s21_s21 }
  0x10   :  { %p1239_p5 = scmp.ne.s32.totalorder %s21_s21, %s1238_s27  ;;  %p1244_p7 = scmp.lt.s32.totalorder %s1238_s27, %s1238_s27 }
  0x12   :  { %p1245_p8 = por %p1244_p7, %p1243_p6 }
  0x14   :  { %p1246_p9 = pnand %p1245_p8, %p1239_p5 }
  0x16   :  { %1249 = shalt.err (!%p1246_p9)
}
  0x17   :  { %26 = dma.hbm_to_vmem [thread:$0]  %s1606_s0, 256, %s21_s21, [#allocation3], %s1340_s23, %s1340_s23, %s1341_s24  }
  0x18   :  { %s1342_s30 = smov [#allocation7]  }
  0x19   :  { %s44_s6 = sshll.u32 %s1342_s30, 4  ;;  %s45_s6 = int_to_ptr.vmem [resolvable:$true] %s44_s6 }
  0x1a   :  { %s1258_s7 = scalar_lea.vmem %s45_s6, 3072  ;;  %p1263_p11 = scmp.lt.s32.totalorder %s45_s6, %s45_s6 }
  0x1b   :  { %p1259_p10 = scmp.ne.s32.totalorder %s45_s6, %s1258_s7  ;;  %p1264_p12 = scmp.lt.s32.totalorder %s1258_s7, %s1258_s7 }
  0x1d   :  { %p1265_p13 = por %p1264_p12, %p1263_p11 }
  0x1f   :  { %p1266_p0 = pnand %p1265_p13, %p1259_p10 }
  0x21   :  { %1269 = shalt.err (!%p1266_p0)
}
  0x22   :  { %50 = dma.hbm_to_vmem [thread:$0]  %s1608_s2, 3072, %s45_s6, [#allocation6], %s1340_s23, %s1340_s23, %s1341_s24  }
  0x23   :  { %1330 = dma.done.wait [#allocation3], 256  }
  0x24   :  { %1331 = vsyncadd [#allocation3], 4294967040 }
  0x25   :  { %1332 = dma.done.wait [#allocation6], 3328  }
  0x26   :  { %1333 = vsyncadd [#allocation6], 4294963968  ;;  %v1343_v0 = vmov 0.0   ;;  %vm1344_vm0 = vmmov 0   ;;  %v1182_v1 = vld [vmem:[#allocation5] sm:$0xff]   ;;  %v1402_v2 = vld [vmem:[#allocation2] sm:$0xff]  }
  0x27   :  { %1016 = vmatprep.subr.bf16.mxu0 %v1343_v0  ;;  %1018 = vmatprep.mubr.msk.bf16.mxu0 %vm1344_vm0, %v1343_v0  ;;  %vm124_vm1 = vcmask 130048   ;;  %v1409_v3 = vld [vmem:[#allocation7 + $0x78] sm:$0xff]   ;;  %v1412_v4 = vld [vmem:[#allocation7 + $0x70] sm:$0xff]   ;;  %v1416_v5 = vld [vmem:[#allocation7 + $0x68] sm:$0xff]   ;;  %s1345_s0 = smov [#allocation8]  }
  0x28   :  { %1022 = vmatprep.subr.bf16.mxu1 %v1343_v0  ;;  %1024 = vmatprep.mubr.msk.bf16.mxu1 %vm1344_vm0, %v1343_v0  ;;  %v1420_v6 = vld [vmem:[#allocation7 + $0x60] sm:$0xff]   ;;  %v1424_v7 = vld [vmem:[#allocation7 + $0x58] sm:$0xff]   ;;  %v1428_v8 = vld [vmem:[#allocation7 + $0x50] sm:$0xff]   ;;  %s858_s2 = sshll.u32 %s1345_s0, 4  ;;  %s859_s2 = int_to_ptr.vmem [resolvable:$true] %s858_s2 }
  0x29   :  { %1017 = vmatpush3.bf16.msra.mxu0 %v1182_v1  ;;  %v1433_v14 = vld [vmem:[#allocation7 + $0x38] sm:$0xff]   ;;  %v1439_v15 = vld [vmem:[#allocation7 + $0x30] sm:$0xff]   ;;  %v1445_v16 = vld [vmem:[#allocation7 + $0x28] sm:$0xff]   ;;  %s1270_s9 = scalar_lea.vmem %s859_s2, 256  ;;  %p1275_p2 = scmp.lt.s32.totalorder %s859_s2, %s859_s2 }
  0x2a   :  { %1028 = vmatprep.subr.bf16.mxu0 %v1343_v0  ;;  %v1449_v17 = vld [vmem:[#allocation7 + $0x20] sm:$0xff]   ;;  %v1453_v18 = vld [vmem:[#allocation7 + $0x18] sm:$0xff]   ;;  %v1457_v19 = vld [vmem:[#allocation7 + $0x10] sm:$0xff]   ;;  %p1271_p1 = scmp.ne.s32.totalorder %s859_s2, %s1270_s9  ;;  %p1276_p3 = scmp.lt.s32.totalorder %s1270_s9, %s1270_s9 }
  0x2b   :  { %v1461_v20 = vld [vmem:[#allocation7 + $0x8] sm:$0xff]   ;;  %v1465_v21 = vld [vmem:[#allocation7] sm:$0xff]   ;;  %v1480_v29 = vld [vmem:[#allocation7 + $0xb8] sm:$0xff]  }
  0x2c   :  { %1019 = vmatmul.mubr.msk.bf16.vlgmr.msra.gmra.mxu0 %vm124_vm1, %v1402_v2  ;;  %v1472_v22 = vld [vmem:[#allocation7 + $0x48] sm:$0xff]   ;;  %v1476_v23 = vld [vmem:[#allocation7 + $0x40] sm:$0xff]   ;;  %v1488_v30 = vld [vmem:[#allocation7 + $0xb0] sm:$0xff]   ;;  %p1277_p4 = por %p1276_p3, %p1275_p2 }
  0x2d   :  { %1044 = vmatprep.mubr.msk.bf16.mxu0 %vm1344_vm0, %v1343_v0  ;;  %1029 = vmatpush3.bf16.msra.mxu0 %v1409_v3  ;;  %v1494_v31 = vld [vmem:[#allocation7 + $0xa8] sm:$0xff]   ;;  %v1498_v32 = vld [vmem:[#allocation7 + $0xa0] sm:$0xff]   ;;  %v1502_v33 = vld [vmem:[#allocation7 + $0x98] sm:$0xff]  }
  0x2e   :  { %1030 = vmatprep.subr.bf16.mxu0 %v1343_v0  ;;  %v1506_v34 = vld [vmem:[#allocation7 + $0x90] sm:$0xff]   ;;  %v1511_v39 = vld [vmem:[#allocation7 + $0x88] sm:$0xff]   ;;  %v1515_v40 = vld [vmem:[#allocation7 + $0x80] sm:$0xff]   ;;  %p1278_p5 = pnand %p1277_p4, %p1271_p1 }
  0x2f   :  { %v1208_v48 = vld [vmem:[#allocation5 + $0x8] sm:$0xff]   ;;  %v1522_v51 = vld [vmem:[#allocation2 + $0x8] sm:$0xff]  }
  0x31   :  { %1031 = vmatpush3.bf16.msra.mxu0 %v1412_v4 }
  0x32   :  { %1032 = vmatprep.subr.bf16.mxu0 %v1343_v0 }
  0x35   :  { %1033 = vmatpush3.bf16.msra.mxu0 %v1416_v5 }
  0x36   :  { %1034 = vmatprep.subr.bf16.mxu0 %v1343_v0 }
  0x39   :  { %1035 = vmatpush3.bf16.msra.mxu0 %v1420_v6 }
  0x3a   :  { %1036 = vmatprep.subr.bf16.mxu0 %v1343_v0 }
  0x3d   :  { %1037 = vmatpush3.bf16.msra.mxu0 %v1424_v7 }
  0x3e   :  { %1038 = vmatprep.subr.bf16.mxu0 %v1343_v0 }
  0x41   :  { %1039 = vmatpush3.bf16.msra.mxu0 %v1428_v8 }
  0x42   :  { %1040 = vmatprep.subr.bf16.mxu0 %v1343_v0 }
  0x45   :  { %1041 = vmatpush3.bf16.msra.mxu0 %v1472_v22 }
  0x46   :  { %1042 = vmatprep.subr.bf16.mxu0 %v1343_v0 }
  0x49   :  { %1043 = vmatpush3.bf16.msra.mxu0 %v1476_v23 }
  0x4a   :  { %1100 = vmatprep.subr.bf16.mxu0 %v1343_v0 }
  0xec   :  { %v162_v9 = vpop.f32.mrf.mxu0 }
  0xee   :  { %v1020_v10 = vpop.f32.mrf.mxu0 }
  0xf0   :  { %v165_v11 = vpop.f32.mrf.mxu0 }
  0xf1   :  { %v169_v12 = vpack.c.bf16 %v165_v11, %v162_v9 }
  0xf2   :  { %v1021_v13 = vpop.f32.mrf.mxu0 }
  0xf3   :  { %1023 = vmatpush3.bf16.msra.mxu1 %v169_v12 }
  0xf4   :  { %1048 = vmatprep.subr.bf16.mxu1 %v1343_v0 }
  0xf6   :  { %1025 = vmatmul.mubr.msk.bf16.vlgmr.msra.gmra.mxu1 %vm124_vm1, %v1402_v2 }
  0xf7   :  { %1049 = vmatpush3.bf16.msra.mxu1 %v1433_v14  ;;  %1064 = vmatprep.mubr.msk.bf16.mxu1 %vm1344_vm0, %v1343_v0 }
  0xf8   :  { %1050 = vmatprep.subr.bf16.mxu1 %v1343_v0 }
  0xfb   :  { %1051 = vmatpush3.bf16.msra.mxu1 %v1439_v15 }
  0xfc   :  { %1052 = vmatprep.subr.bf16.mxu1 %v1343_v0 }
  0xff   :  { %1053 = vmatpush3.bf16.msra.mxu1 %v1445_v16 }
 0x100   :  { %1054 = vmatprep.subr.bf16.mxu1 %v1343_v0 }
 0x103   :  { %1055 = vmatpush3.bf16.msra.mxu1 %v1449_v17 }
 0x104   :  { %1056 = vmatprep.subr.bf16.mxu1 %v1343_v0 }
 0x107   :  { %1057 = vmatpush3.bf16.msra.mxu1 %v1453_v18 }
 0x108   :  { %1058 = vmatprep.subr.bf16.mxu1 %v1343_v0 }
 0x10b   :  { %1059 = vmatpush3.bf16.msra.mxu1 %v1457_v19 }
 0x10c   :  { %1060 = vmatprep.subr.bf16.mxu1 %v1343_v0 }
 0x10f   :  { %1061 = vmatpush3.bf16.msra.mxu1 %v1461_v20 }
 0x110   :  { %1062 = vmatprep.subr.bf16.mxu1 %v1343_v0 }
 0x113   :  { %1063 = vmatpush3.bf16.msra.mxu1 %v1465_v21 }
 0x114   :  { %1068 = vmatprep.subr.bf16.mxu1 %v1343_v0 }
 0x116   :  { %1065 = vmatmul.mubr.bf16.vlgmr.msra.gmra.mxu1 %v169_v12 }
 0x117   :  { %1070 = vmatprep.mubr.msk.bf16.mxu1 %vm1344_vm0, %v1343_v0 }
 0x1b6   :  { %v204_v24 = vpop.f32.mrf.mxu1 }
 0x1b8   :  { %v1026_v25 = vpop.f32.mrf.mxu1 }
 0x1ba   :  { %v207_v26 = vpop.f32.mrf.mxu1 }
 0x1bb   :  { %v211_v27 = vpack.c.bf16 %v207_v26, %v204_v24 }
 0x1bc   :  { %v1027_v28 = vpop.f32.mrf.mxu1 }
 0x1bd   :  { %1045 = vmatmul.mubr.bf16.vlgmr.msra.gmra.mxu0 %v211_v27  ;;  %1069 = vmatpush3.bf16.msra.mxu1 %v211_v27 }
 0x1be   :  { %1074 = vmatprep.subr.bf16.mxu1 %v1343_v0  ;;  %1102 = vmatprep.mubr.msk.bf16.mxu0 %vm1344_vm0, %v1343_v0 }
 0x1c0   :  { %1071 = vmatmul.mubr.msk.bf16.vlgmr.msra.gmra.mxu1 %vm124_vm1, %v1402_v2 }
 0x1c1   :  { %1075 = vmatpush3.bf16.msra.mxu1 %v1480_v29  ;;  %1090 = vmatprep.mubr.msk.bf16.mxu1 %vm1344_vm0, %v1343_v0 }
 0x1c2   :  { %1076 = vmatprep.subr.bf16.mxu1 %v1343_v0 }
 0x1c5   :  { %1077 = vmatpush3.bf16.msra.mxu1 %v1488_v30 }
 0x1c6   :  { %1078 = vmatprep.subr.bf16.mxu1 %v1343_v0 }
 0x1c9   :  { %1079 = vmatpush3.bf16.msra.mxu1 %v1494_v31 }
 0x1ca   :  { %1080 = vmatprep.subr.bf16.mxu1 %v1343_v0 }
 0x1cd   :  { %1081 = vmatpush3.bf16.msra.mxu1 %v1498_v32 }
 0x1ce   :  { %1082 = vmatprep.subr.bf16.mxu1 %v1343_v0 }
 0x1d1   :  { %1083 = vmatpush3.bf16.msra.mxu1 %v1502_v33 }
 0x1d2   :  { %1084 = vmatprep.subr.bf16.mxu1 %v1343_v0 }
 0x1d5   :  { %1085 = vmatpush3.bf16.msra.mxu1 %v1506_v34 }
 0x1d6   :  { %v383_v35 = vpop.f32.mrf.mxu1  ;;  %1086 = vmatprep.subr.bf16.mxu1 %v1343_v0 }
 0x1d8   :  { %v1066_v36 = vpop.f32.mrf.mxu1 }
 0x1d9   :  { %1087 = vmatpush3.bf16.msra.mxu1 %v1511_v39 }
 0x1da   :  { %v386_v37 = vpop.f32.mrf.mxu1  ;;  %1088 = vmatprep.subr.bf16.mxu1 %v1343_v0 }
 0x1dc   :  { %v1067_v38 = vpop.f32.mrf.mxu1 }
 0x1dd   :  { %1089 = vmatpush3.bf16.msra.mxu1 %v1515_v40 }
 0x1de   :  { %1094 = vmatprep.subr.bf16.mxu1 %v1343_v0 }
 0x27d   :  { %v294_v41 = vpop.f32.mrf.mxu0 }
 0x27e   :  { %v384_v53 = vadd.f32 %v383_v35, %v294_v41 }
 0x27f   :  { %v1046_v42 = vpop.f32.mrf.mxu0 }
 0x280   :  { %v424_v43 = vpop.f32.mrf.mxu1 }
 0x281   :  { %v297_v44 = vpop.f32.mrf.mxu0 }
 0x282   :  { %v1072_v45 = vpop.f32.mrf.mxu1  ;;  %v387_v55 = vadd.f32 %v386_v37, %v297_v44 }
 0x283   :  { %v1047_v46 = vpop.f32.mrf.mxu0 }
 0x284   :  { %v427_v47 = vpop.f32.mrf.mxu1 }
 0x285   :  { %v431_v49 = vpack.c.bf16 %v427_v47, %v424_v43 }
 0x286   :  { %v1073_v50 = vpop.f32.mrf.mxu1 }
 0x287   :  { %1091 = vmatmul.mubr.bf16.vlgmr.msra.gmra.mxu1 %v431_v49 }
 0x288   :  { %1095 = vmatpush3.bf16.msra.mxu1 %v1208_v48  ;;  %1096 = vmatprep.mubr.msk.bf16.mxu1 %vm1344_vm0, %v1343_v0 }
 0x289   :  { %1126 = vmatprep.subr.bf16.mxu1 %v1343_v0 }
 0x28f   :  { %1097 = vmatmul.mubr.msk.bf16.vlgmr.msra.gmra.mxu1 %vm124_vm1, %v1522_v51 }
 0x290   :  { %1127 = vmatpush3.bf16.msra.mxu1 %v1433_v14  ;;  %1142 = vmatprep.mubr.msk.bf16.mxu1 %vm1344_vm0, %v1343_v0 }
 0x291   :  { %1128 = vmatprep.subr.bf16.mxu1 %v1343_v0 }
 0x294   :  { %1129 = vmatpush3.bf16.msra.mxu1 %v1439_v15 }
 0x295   :  { %1130 = vmatprep.subr.bf16.mxu1 %v1343_v0 }
 0x298   :  { %1131 = vmatpush3.bf16.msra.mxu1 %v1445_v16 }
 0x299   :  { %1132 = vmatprep.subr.bf16.mxu1 %v1343_v0 }
 0x29c   :  { %1133 = vmatpush3.bf16.msra.mxu1 %v1449_v17 }
 0x29d   :  { %1134 = vmatprep.subr.bf16.mxu1 %v1343_v0 }
 0x2a0   :  { %1135 = vmatpush3.bf16.msra.mxu1 %v1453_v18 }
 0x2a1   :  { %1136 = vmatprep.subr.bf16.mxu1 %v1343_v0 }
 0x2a4   :  { %1137 = vmatpush3.bf16.msra.mxu1 %v1457_v19 }
 0x2a5   :  { %1138 = vmatprep.subr.bf16.mxu1 %v1343_v0 }
 0x2a8   :  { %1139 = vmatpush3.bf16.msra.mxu1 %v1461_v20 }
 0x2a9   :  { %1140 = vmatprep.subr.bf16.mxu1 %v1343_v0 }
 0x2ac   :  { %1141 = vmatpush3.bf16.msra.mxu1 %v1465_v21 }
 0x347   :  { %v514_v52 = vpop.f32.mrf.mxu1 }
 0x348   :  { %v521_v56 = vadd.f32 %v514_v52, %v384_v53 }
 0x349   :  { %v1092_v54 = vpop.f32.mrf.mxu1 }
 0x34a   :  { %v541_v60 = vmul.f32 %v521_v56, %v521_v56 }
 0x34b   :  { %v517_v57 = vpop.f32.mrf.mxu1 }
 0x34c   :  { %v522_v58 = vadd.f32 %v517_v57, %v387_v55 }
 0x34d   :  { %v1093_v59 = vpop.f32.mrf.mxu1 }
 0x34e   :  { %v943_v61 = vpack.c.bf16 %v522_v58, %v521_v56  ;;  %v1543_v62 = vadd.f32 %v522_v58, %v521_v56  ;;  %v542_v63 = vmul.f32 %v522_v58, %v522_v58 }
 0x34f   :  { %v605_v1 = vpop.f32.mrf.mxu1 }
 0x350   :  { %v1545_v2 = vadd.f32 %v542_v63, %v541_v60  ;;  %944 = vst [vmem:[#allocation8] sm:$0xff] %v943_v61   ;;  %v534_v25 = vrot.slane %v1543_v62, 4 }
 0x351   :  { %v1098_v9 = vpop.f32.mrf.mxu1 }
 0x352   :  { %v544_v27 = vrot.slane %v1545_v2, 4 }
 0x353   :  { %v608_v10 = vpop.f32.mrf.mxu1 }
 0x354   :  { %v612_v11 = vpack.c.bf16 %v608_v10, %v605_v1 }
 0x355   :  { %v1099_v12 = vpop.f32.mrf.mxu1 }
 0x356   :  { %1101 = vmatpush3.bf16.msra.mxu0 %v612_v11  ;;  %1143 = vmatmul.mubr.bf16.vlgmr.msra.gmra.mxu1 %v612_v11 }
 0x357   :  { %1106 = vmatprep.subr.bf16.mxu0 %v1343_v0 }
 0x359   :  { %1103 = vmatmul.mubr.msk.bf16.vlgmr.msra.gmra.mxu0 %vm124_vm1, %v1522_v51 }
 0x35a   :  { %1107 = vmatpush3.bf16.msra.mxu0 %v1409_v3  ;;  %1122 = vmatprep.mubr.msk.bf16.mxu0 %vm1344_vm0, %v1343_v0 }
 0x35b   :  { %1108 = vmatprep.subr.bf16.mxu0 %v1343_v0 }
 0x35e   :  { %1109 = vmatpush3.bf16.msra.mxu0 %v1412_v4 }
 0x35f   :  { %1110 = vmatprep.subr.bf16.mxu0 %v1343_v0 }
 0x362   :  { %1111 = vmatpush3.bf16.msra.mxu0 %v1416_v5 }
 0x363   :  { %1112 = vmatprep.subr.bf16.mxu0 %v1343_v0 }
 0x366   :  { %1113 = vmatpush3.bf16.msra.mxu0 %v1420_v6 }
 0x367   :  { %1114 = vmatprep.subr.bf16.mxu0 %v1343_v0 }
 0x36a   :  { %1115 = vmatpush3.bf16.msra.mxu0 %v1424_v7 }
 0x36b   :  { %1116 = vmatprep.subr.bf16.mxu0 %v1343_v0 }
 0x36e   :  { %1117 = vmatpush3.bf16.msra.mxu0 %v1428_v8 }
 0x36f   :  { %1118 = vmatprep.subr.bf16.mxu0 %v1343_v0 }
 0x372   :  { %1119 = vmatpush3.bf16.msra.mxu0 %v1472_v22 }
 0x373   :  { %1120 = vmatprep.subr.bf16.mxu0 %v1343_v0 }
 0x376   :  { %1121 = vmatpush3.bf16.msra.mxu0 %v1476_v23 }
 0x377   :  { %1146 = vmatprep.subr.bf16.mxu0 %v1343_v0 }
 0x416   :  { %v730_v3 = vpop.f32.mrf.mxu1 }
 0x418   :  { %v1144_v4 = vpop.f32.mrf.mxu1 }
 0x419   :  { %v647_v5 = vpop.f32.mrf.mxu0 }
 0x41a   :  { %v733_v6 = vpop.f32.mrf.mxu1 }
 0x41b   :  { %v1104_v13 = vpop.f32.mrf.mxu0 }
 0x41c   :  { %v1145_v7 = vpop.f32.mrf.mxu1 }
 0x41d   :  { %v650_v14 = vpop.f32.mrf.mxu0 }
 0x41e   :  { %v654_v15 = vpack.c.bf16 %v650_v14, %v647_v5 }
 0x41f   :  { %v1105_v16 = vpop.f32.mrf.mxu0 }
 0x420   :  { %1123 = vmatmul.mubr.bf16.vlgmr.msra.gmra.mxu0 %v654_v15 }
 0x421   :  { %1147 = vmatpush3.bf16.msra.mxu0 %v654_v15  ;;  %1148 = vmatprep.mubr.msk.bf16.mxu0 %vm1344_vm0, %v1343_v0 }
 0x422   :  { %1152 = vmatprep.subr.bf16.mxu0 %v1343_v0 }
 0x428   :  { %1149 = vmatmul.mubr.msk.bf16.vlgmr.msra.gmra.mxu0 %vm124_vm1, %v1522_v51 }
 0x429   :  { %1153 = vmatpush3.bf16.msra.mxu0 %v1480_v29  ;;  %1168 = vmatprep.mubr.msk.bf16.mxu0 %vm1344_vm0, %v1343_v0 }
 0x42a   :  { %1154 = vmatprep.subr.bf16.mxu0 %v1343_v0 }
 0x42d   :  { %1155 = vmatpush3.bf16.msra.mxu0 %v1488_v30 }
 0x42e   :  { %1156 = vmatprep.subr.bf16.mxu0 %v1343_v0 }
 0x431   :  { %1157 = vmatpush3.bf16.msra.mxu0 %v1494_v31 }
 0x432   :  { %1158 = vmatprep.subr.bf16.mxu0 %v1343_v0 }
 0x435   :  { %1159 = vmatpush3.bf16.msra.mxu0 %v1498_v32 }
 0x436   :  { %1160 = vmatprep.subr.bf16.mxu0 %v1343_v0 }
 0x439   :  { %1161 = vmatpush3.bf16.msra.mxu0 %v1502_v33  ;;  %v545_v33 = vadd.f32 %v544_v27, %v1545_v2 }
 0x43a   :  { %1162 = vmatprep.subr.bf16.mxu0 %v1343_v0 }
 0x43b   :  { %v546_v41 = vrot.slane %v545_v33, 2 }
 0x43d   :  { %1163 = vmatpush3.bf16.msra.mxu0 %v1506_v34 }
 0x43e   :  { %1164 = vmatprep.subr.bf16.mxu0 %v1343_v0 }
 0x441   :  { %1165 = vmatpush3.bf16.msra.mxu0 %v1511_v39 }
 0x442   :  { %1166 = vmatprep.subr.bf16.mxu0 %v1343_v0  ;;  %v535_v0 = vadd.f32 %v534_v25, %v1543_v62 }
 0x444   :  { %v536_v35 = vrot.slane %v535_v0, 2 }
 0x445   :  { %1167 = vmatpush3.bf16.msra.mxu0 %v1515_v40 }
 0x4e0   :  { %v689_v8 = vpop.f32.mrf.mxu0 }
 0x4e1   :  { %v731_v28 = vadd.f32 %v730_v3, %v689_v8 }
 0x4e2   :  { %v1124_v17 = vpop.f32.mrf.mxu0 }
 0x4e4   :  { %v692_v18 = vpop.f32.mrf.mxu0 }
 0x4e5   :  { %v734_v30 = vadd.f32 %v733_v6, %v692_v18 }
 0x4e6   :  { %v1125_v19 = vpop.f32.mrf.mxu0 }
 0x4e8   :  { %v771_v20 = vpop.f32.mrf.mxu0 }
 0x4ea   :  { %v1150_v21 = vpop.f32.mrf.mxu0 }
 0x4ec   :  { %v774_v22 = vpop.f32.mrf.mxu0 }
 0x4ed   :  { %v778_v23 = vpack.c.bf16 %v774_v22, %v771_v20 }
 0x4ee   :  { %v1151_v24 = vpop.f32.mrf.mxu0 }
 0x4ef   :  { %1169 = vmatmul.mubr.bf16.vlgmr.msra.gmra.mxu0 %v778_v23 }
 0x5af   :  { %v813_v26 = vpop.f32.mrf.mxu0 }
 0x5b0   :  { %v820_v31 = vadd.f32 %v813_v26, %v731_v28 }
 0x5b1   :  { %v1170_v29 = vpop.f32.mrf.mxu0 }
 0x5b2   :  { %v841_v37 = vmul.f32 %v820_v31, %v820_v31 }
 0x5b3   :  { %v816_v32 = vpop.f32.mrf.mxu0 }
 0x5b4   :  { %v821_v34 = vadd.f32 %v816_v32, %v734_v30 }
 0x5b5   :  { %v1171_v36 = vpop.f32.mrf.mxu0 }
 0x5b6   :  { %v948_v38 = vpack.c.bf16 %v821_v34, %v820_v31  ;;  %v833_v39 = vadd.f32 %v821_v34, %v820_v31  ;;  %v842_v40 = vmul.f32 %v821_v34, %v821_v34 }
 0x5b8   :  { %v834_v42 = vrot.slane %v833_v39, 4  ;;  %v843_v43 = vadd.f32 %v842_v40, %v841_v37  ;;  %949 = vst [vmem:[#allocation8 + $0x8] sm:$0xff] %v948_v38  }
 0x5b9   :  { %1281 = shalt.err (!%p1278_p5)
}
 0x5ba   :  { %864 = dma.vmem_to_hbm [thread:$0]  %s859_s2, 256, %s1609_s3, [#allocation4], %s1340_s23, %s1340_s23, %s1341_s24   ;;  %v835_v44 = vadd.f32 %v834_v42, %v833_v39  ;;  %v844_v45 = vrot.slane %v843_v43, 4  ;;  %v537_v46 = vadd.f32 %v536_v35, %v535_v0  ;;  %v547_v49 = vadd.f32 %v546_v41, %v545_v33 }
 0x5bb   :  { %s1346_s12 = smov [#allocation9]   ;;  %s1347_s14 = smov [#allocation11]  }
 0x5bc   :  { %v836_v47 = vrot.slane %v835_v44, 2  ;;  %v845_v48 = vadd.f32 %v844_v45, %v843_v43  ;;  %v538_v51 = vrot.slane %v537_v46, 1  ;;  %v548_v54 = vrot.slane %v547_v49, 1  ;;  %s871_s13 = sshll.u32 %s1346_s12, 4  ;;  %s881_s15 = sshll.u32 %s1347_s14, 4  ;;  %s872_s13 = int_to_ptr.vmem [resolvable:$true] %s871_s13  ;;  %s882_s15 = int_to_ptr.vmem [resolvable:$true] %s881_s15 }
 0x5bd   :  { %s1290_s3 = scalar_lea.vmem %s872_s13, 16  ;;  %s1294_s16 = scalar_lea.vmem %s872_s13, 32 }
 0x5be   :  { %v846_v50 = vrot.slane %v845_v48, 2  ;;  %v837_v52 = vadd.f32 %v836_v47, %v835_v44  ;;  %v539_v56 = vadd.f32 %v538_v51, %v537_v46  ;;  %v549_v60 = vadd.f32 %v548_v54, %v547_v49  ;;  %p1291_p6 = scmp.ne.s32.totalorder %s872_s13, %s1290_s3  ;;  %p1295_p7 = scmp.lt.s32.totalorder %s872_s13, %s872_s13 }
 0x5bf   :  { %p1296_p8 = scmp.lt.s32.totalorder %s1294_s16, %s1290_s3 }
 0x5c0   :  { %v838_v53 = vrot.slane %v837_v52, 1  ;;  %v847_v55 = vadd.f32 %v846_v50, %v845_v48 }
 0x5c1   :  { %p1297_p9 = por %p1296_p8, %p1295_p7 }
 0x5c2   :  { %v839_v57 = vadd.f32 %v838_v53, %v837_v52  ;;  %v848_v58 = vrot.slane %v847_v55, 1 }
 0x5c3   :  { %p1298_p10 = pnand %p1297_p9, %p1291_p6 }
 0x5c4   :  { %v840_v59 = vadd.f32 %v839_v57, %v539_v56  ;;  %v849_v61 = vadd.f32 %v848_v58, %v847_v55 }
 0x5c6   :  { %851 = vst [vmem:[#allocation9] sm:$0x1] %v840_v59  ;;  %v850_v62 = vadd.f32 %v849_v61, %v549_v60 }
 0x5c7   :  { %1301 = shalt.err (!%p1298_p10)
}
 0x5c8   :  { %874 = dma.vmem_to_hbm [thread:$0]  %s872_s13, 16, %s1610_s4, [#allocation10]   ;;  %852 = vst [vmem:[#allocation11] sm:$0x1] %v850_v62 }
 0x5c9   :  { %s1310_s19 = scalar_lea.vmem %s882_s15, 16  ;;  %s1314_s20 = scalar_lea.vmem %s882_s15, 32 }
 0x5ca   :  { %p1311_p11 = scmp.ne.s32.totalorder %s882_s15, %s1310_s19  ;;  %p1315_p12 = scmp.lt.s32.totalorder %s882_s15, %s882_s15 }
 0x5cb   :  { %p1316_p13 = scmp.lt.s32.totalorder %s1314_s20, %s1310_s19 }
 0x5cd   :  { %p1317_p0 = por %p1316_p13, %p1315_p12 }
 0x5cf   :  { %p1318_p1 = pnand %p1317_p0, %p1311_p11 }
 0x5d1   :  { %1321 = shalt.err (!%p1318_p1)
}
 0x5d2   :  { %884 = dma.vmem_to_hbm [thread:$0]  %s882_s15, 16, %s1611_s5, [#allocation10]  }
 0x5d3   :  { %1334 = dma.done.wait [#allocation4], 256  }
 0x5d4   :  { %1335 = vsyncadd [#allocation4], 4294967040 }
 0x5d5   :  { %1336 = dma.done.wait [#allocation10], 32  }
 0x5d6   :  { %1337 = vsyncadd [#allocation10], 4294967264 }
 0x5d7   :  { %894 = vsyncpa [#allocation3], 1 }
 0x5d8   :  { %895 = vsyncpa [#allocation6], 1 }
 0x5d9   :  { %896 = vsyncpa [#allocation4], 1 }
 0x5da   :  { %897 = vsyncpa [#allocation10], 1 }

</bundles_post_ra>
